<compile_context>
chip_gen: v5e
topology: v5e:2x2
jax: 0.10.0
libtpu: 0.0.40
codegen_flags: <defaults>
</compile_context>

<pallas_src>
import functools

import jax
import jax.numpy as jnp
from jax.experimental import pallas as pl
from jax.experimental.pallas import tpu as pltpu

_BN_EPS = 1e-5
_LANE = 128  # keep 128 on v5e/v6e/v7x; wider padding only adds zero work


def _round_up(n, m):
    return -(-n // m) * m


# ---------------------------------------------------------------------------
# One-time parameter prep (call OUTSIDE jit / the per-forward path)
# ---------------------------------------------------------------------------
def prepare_ffnet_params(params, lane=_LANE):
    """Zero-pad every feature dim to a common lane multiple and stack layers.

    Returns:
      w_stack:   (L, DP, DP) f32, real block at [:din, :dout], padding ZERO
      vec_stack: (L, 8,  DP) f32, row 0 = gamma, row 1 = beta, row 2 = bias,
                 rows 3..7 and all padded lanes ZERO
      dp:        padded feature width (int)
      d_out:     real output width of the last layer (int)
    """
    dims = [params[0][2].shape[0]] + [p[2].shape[1] for p in params]
    dp = _round_up(max(dims), lane)

    w_stack, vec_stack = [], []
    d_prev = params[0][2].shape[0]
    for (gamma, beta, w, b) in params:
        din, dout = w.shape
        assert din == d_prev, "layer widths must chain"
        d_prev = dout
        # Padded regions are ZERO by construction (required by the kernel).
        wp = jnp.zeros((dp, dp), jnp.float32).at[:din, :dout].set(w)
        vec = (jnp.zeros((8, dp), jnp.float32)
               .at[0, :din].set(gamma)
               .at[1, :din].set(beta)
               .at[2, :dout].set(b))
        w_stack.append(wp)
        vec_stack.append(vec)

    return (jnp.stack(w_stack), jnp.stack(vec_stack), dp,
            int(params[-1][2].shape[1]))


# ---------------------------------------------------------------------------
# Fused kernel
# ---------------------------------------------------------------------------
def _ffnet_fused_kernel(x_ref, w_ref, vec_ref, o_ref, *, num_layers, eps, d_out):
    """Fused FFNetV1 forward: per layer BN(batch stats) -> Linear (-> ReLU)."""
    x = x_ref[...].astype(jnp.float32)                       # (B, DP)

    for i in range(num_layers):                              # static unroll
        v = vec_ref[i]                                       # (8, DP)
        gamma, beta, bias = v[0:1, :], v[1:2, :], v[2:3, :]

        # --- BatchNorm1d (training mode, biased variance), fused reductions:
        #     mean and E[x^2] in one pass, var = E[x^2] - mean^2.
        mean = jnp.mean(x, axis=0, keepdims=True)            # (1, DP)
        mean_sq = jnp.mean(x * x, axis=0, keepdims=True)     # (1, DP)
        var = jnp.maximum(mean_sq - mean * mean, 0.0)
        # Fold gamma * rsqrt(var+eps) and beta into one per-column FMA.
        scale = gamma * jax.lax.rsqrt(var + eps)             # EUP rsqrt
        shift = beta - mean * scale
        x_hat = x * scale + shift                            # (B, DP), f32

        # --- Linear: f32 operands, f32 accumulation on the MXU.  At these
        # widths the matmul is latency-bound, so bf16 operands buy nothing.
        y = jnp.dot(x_hat, w_ref[i],
                    preferred_element_type=jnp.float32) + bias
        if i < num_layers - 1:                               # hidden ReLU
            y = jnp.maximum(y, 0.0)
        x = y

    # Emit the real (B, d_out) output directly (single masked vst) so the
    # wrapper needs no follow-up slice HLO.
    o_ref[...] = x[:, :d_out].astype(o_ref.dtype)


# ---------------------------------------------------------------------------
# Per-call wrapper (only the activation padding remains in the jitted path)
# ---------------------------------------------------------------------------
def ffnet_v1_forward(x, w_stack, vec_stack, *, d_out):
    """FFNetV1.forward as a single fused pallas_call.

    x: (B, Din) float32.  w_stack / vec_stack come from prepare_ffnet_params
    (one-time, hoisted out of the per-call path).
    """
    B, d_in = x.shape
    L, dp, _ = w_stack.shape
    xp = jnp.pad(x, ((0, 0), (0, dp - d_in))) if d_in != dp else x

    kernel = functools.partial(_ffnet_fused_kernel, num_layers=L,
                               eps=_BN_EPS, d_out=d_out)

    return pl.pallas_call(
        kernel,
        out_shape=jax.ShapeDtypeStruct((B, d_out), x.dtype),
        in_specs=[pl.BlockSpec((B, dp), lambda: (0, 0)),
                  pl.BlockSpec((L, dp, dp), lambda: (0, 0, 0)),
                  pl.BlockSpec((L, 8, dp), lambda: (0, 0, 0))],
        out_specs=pl.BlockSpec((B, d_out), lambda: (0, 0)),
        compiler_params=pltpu.CompilerParams(
            # Tiny footprint today; explicit cap keeps us inside v7x's 64 MiB
            # VMEM if widths are ever scaled up (see TODO at top of file).
            vmem_limit_bytes=32 * 1024 * 1024),
    )(xp, w_stack, vec_stack)


# ---------------------------------------------------------------------------
# Deterministic init + pure-JAX reference
# ---------------------------------------------------------------------------
def make_ffnet_params(key, num_layers, input_units, hidden_units, output_units):
    """Deterministic parameter init mirroring FFNetV1.__init__ layer shapes."""
    if not isinstance(hidden_units, (list, tuple)):
        hidden_units = [hidden_units] * (num_layers - 1)
    units = [input_units] + list(hidden_units) + [output_units]

    params = []
    for i in range(1, len(units)):
        din, dout = units[i - 1], units[i]
        key, k_g, k_b, k_w, k_bb = jax.random.split(key, 5)
        gamma = 1.0 + 0.1 * jax.random.normal(k_g, (din,), jnp.float32)
        beta = 0.1 * jax.random.normal(k_b, (din,), jnp.float32)
        bound = 1.0 / jnp.sqrt(jnp.float32(din))
        w = jax.random.uniform(k_w, (din, dout), jnp.float32, -bound, bound)
        b = jax.random.uniform(k_bb, (dout,), jnp.float32, -bound, bound)
        params.append((gamma, beta, w, b))
    return params


def _reference_forward(x, params):
    """Pure-JAX f32 reference matching PyTorch training-mode BN semantics."""
    n = len(params)
    for i, (gamma, beta, w, b) in enumerate(params):
        mean = jnp.mean(x, axis=0, keepdims=True)
        var = jnp.mean((x - mean) ** 2, axis=0, keepdims=True)
        xh = (x - mean) / jnp.sqrt(var + _BN_EPS)
        xh = xh * gamma[None, :] + beta[None, :]
        x = xh @ w + b[None, :]
        if i < n - 1:
            x = jnp.maximum(x, 0.0)
    return x


if __name__ == "__main__":
    key = jax.random.PRNGKey(0)
    num_layers = 3
    input_units = 16
    hidden_units = 32
    output_units = 8
    batch = 8

    key, k_x, k_p = jax.random.split(key, 3)
    x = jax.random.normal(k_x, (batch, input_units), jnp.float32)
    params = make_ffnet_params(k_p, num_layers, input_units, hidden_units,
                               output_units)

    # One-time prep (hoisted out of the per-call path per perf review).
    w_stack, vec_stack, _dp, d_out = prepare_ffnet_params(params)
    w_stack = jax.device_put(w_stack)
    vec_stack = jax.device_put(vec_stack)

    fwd = jax.jit(functools.partial(ffnet_v1_forward, d_out=d_out))
    out = jax.block_until_ready(fwd(x, w_stack, vec_stack))

    ref = _reference_forward(x, params)
    assert out.shape == (batch, output_units)
    # All math is f32 now (no bf16 operand casts); tolerance covers accumulated
    # per-layer MXU rounding with comfortable margin (tighter than the previous
    # bf16 version's 2e-2).
    assert jnp.allclose(out, ref, atol=1e-2, rtol=1e-2), "mismatch vs reference"

    print("KERNEL_OK")
</pallas_src>

<mosaic_0001>
module attributes {stable_mosaic.version = 11 : i64} {
  func.func @_ffnet_fused_kernel(%arg0: memref<8x128xf32, #tpu.memory_space<vmem>>, %arg1: memref<3x128x128xf32, #tpu.memory_space<vmem>>, %arg2: memref<3x8x128xf32, #tpu.memory_space<vmem>>, %arg3: memref<8x8xf32, #tpu.memory_space<vmem>>) attributes {dimension_semantics = [], scalar_prefetch = 0 : i64, scratch_operands = 0 : i64, tpu.core_type = #tpu.core_type<tc>} {
    %c0 = arith.constant 0 : index
    %c0_0 = arith.constant 0 : index
    %0 = vector.load %arg0[%c0, %c0_0] : memref<8x128xf32, #tpu.memory_space<vmem>>, vector<8x128xf32>
    %c0_1 = arith.constant 0 : index
    %c0_2 = arith.constant 0 : index
    %c0_3 = arith.constant 0 : index
    %1 = vector.load %arg2[%c0_1, %c0_2, %c0_3] : memref<3x8x128xf32, #tpu.memory_space<vmem>>, vector<1x8x128xf32>
    %2 = vector.shape_cast %1 : vector<1x8x128xf32> to vector<8x128xf32>
    %3 = vector.extract_strided_slice %2 {offsets = [0, 0], sizes = [1, 128], strides = [1, 1]} : vector<8x128xf32> to vector<1x128xf32>
    %4 = vector.extract_strided_slice %2 {offsets = [1, 0], sizes = [1, 128], strides = [1, 1]} : vector<8x128xf32> to vector<1x128xf32>
    %5 = vector.extract_strided_slice %2 {offsets = [2, 0], sizes = [1, 128], strides = [1, 1]} : vector<8x128xf32> to vector<1x128xf32>
    %cst = arith.constant dense<0.000000e+00> : vector<128xf32>
    %6 = vector.multi_reduction <add>, %0, %cst [0] : vector<8x128xf32> to vector<128xf32>
    %7 = vector.shape_cast %6 : vector<128xf32> to vector<1x128xf32>
    %cst_4 = arith.constant 8.000000e+00 : f32
    %8 = vector.broadcast %cst_4 : f32 to vector<1x128xf32>
    %9 = arith.divf %7, %8 : vector<1x128xf32>
    %10 = arith.mulf %0, %0 : vector<8x128xf32>
    %cst_5 = arith.constant dense<0.000000e+00> : vector<128xf32>
    %11 = vector.multi_reduction <add>, %10, %cst_5 [0] : vector<8x128xf32> to vector<128xf32>
    %12 = vector.shape_cast %11 : vector<128xf32> to vector<1x128xf32>
    %cst_6 = arith.constant 8.000000e+00 : f32
    %13 = vector.broadcast %cst_6 : f32 to vector<1x128xf32>
    %14 = arith.divf %12, %13 : vector<1x128xf32>
    %15 = arith.mulf %9, %9 : vector<1x128xf32>
    %16 = arith.subf %14, %15 : vector<1x128xf32>
    %cst_7 = arith.constant 0.000000e+00 : f32
    %17 = vector.broadcast %cst_7 : f32 to vector<1x128xf32>
    %18 = arith.maximumf %16, %17 : vector<1x128xf32>
    %cst_8 = arith.constant 9.99999974E-6 : f32
    %19 = vector.broadcast %cst_8 : f32 to vector<1x128xf32>
    %20 = arith.addf %18, %19 : vector<1x128xf32>
    %21 = math.rsqrt %20 : vector<1x128xf32>
    %22 = arith.mulf %3, %21 : vector<1x128xf32>
    %23 = arith.mulf %9, %22 : vector<1x128xf32>
    %24 = arith.subf %4, %23 : vector<1x128xf32>
    %25 = vector.broadcast %22 : vector<1x128xf32> to vector<8x128xf32>
    %26 = arith.mulf %0, %25 : vector<8x128xf32>
    %27 = vector.broadcast %24 : vector<1x128xf32> to vector<8x128xf32>
    %28 = arith.addf %26, %27 : vector<8x128xf32>
    %c0_9 = arith.constant 0 : index
    %c0_10 = arith.constant 0 : index
    %c0_11 = arith.constant 0 : index
    %29 = vector.load %arg1[%c0_9, %c0_10, %c0_11] : memref<3x128x128xf32, #tpu.memory_space<vmem>>, vector<1x128x128xf32>
    %30 = vector.shape_cast %29 : vector<1x128x128xf32> to vector<128x128xf32>
    %cst_12 = arith.constant dense<0.000000e+00> : vector<8x128xf32>
    %31 = tpu.matmul %28, %30, %cst_12 {dimension_numbers = #tpu.dot_dimension_numbers<[1], [0], [0], [1], [0, 0, 1, 1], [], []>} : vector<8x128xf32>, vector<128x128xf32>, vector<8x128xf32> -> vector<8x128xf32>
    %32 = vector.broadcast %5 : vector<1x128xf32> to vector<8x128xf32>
    %33 = arith.addf %31, %32 : vector<8x128xf32>
    %cst_13 = arith.constant 0.000000e+00 : f32
    %34 = vector.broadcast %cst_13 : f32 to vector<8x128xf32>
    %35 = arith.maximumf %33, %34 : vector<8x128xf32>
    %c1 = arith.constant 1 : index
    %c0_14 = arith.constant 0 : index
    %c0_15 = arith.constant 0 : index
    %36 = vector.load %arg2[%c1, %c0_14, %c0_15] : memref<3x8x128xf32, #tpu.memory_space<vmem>>, vector<1x8x128xf32>
    %37 = vector.shape_cast %36 : vector<1x8x128xf32> to vector<8x128xf32>
    %38 = vector.extract_strided_slice %37 {offsets = [0, 0], sizes = [1, 128], strides = [1, 1]} : vector<8x128xf32> to vector<1x128xf32>
    %39 = vector.extract_strided_slice %37 {offsets = [1, 0], sizes = [1, 128], strides = [1, 1]} : vector<8x128xf32> to vector<1x128xf32>
    %40 = vector.extract_strided_slice %37 {offsets = [2, 0], sizes = [1, 128], strides = [1, 1]} : vector<8x128xf32> to vector<1x128xf32>
    %cst_16 = arith.constant dense<0.000000e+00> : vector<128xf32>
    %41 = vector.multi_reduction <add>, %35, %cst_16 [0] : vector<8x128xf32> to vector<128xf32>
    %42 = vector.shape_cast %41 : vector<128xf32> to vector<1x128xf32>
    %cst_17 = arith.constant 8.000000e+00 : f32
    %43 = vector.broadcast %cst_17 : f32 to vector<1x128xf32>
    %44 = arith.divf %42, %43 : vector<1x128xf32>
    %45 = arith.mulf %35, %35 : vector<8x128xf32>
    %cst_18 = arith.constant dense<0.000000e+00> : vector<128xf32>
    %46 = vector.multi_reduction <add>, %45, %cst_18 [0] : vector<8x128xf32> to vector<128xf32>
    %47 = vector.shape_cast %46 : vector<128xf32> to vector<1x128xf32>
    %cst_19 = arith.constant 8.000000e+00 : f32
    %48 = vector.broadcast %cst_19 : f32 to vector<1x128xf32>
    %49 = arith.divf %47, %48 : vector<1x128xf32>
    %50 = arith.mulf %44, %44 : vector<1x128xf32>
    %51 = arith.subf %49, %50 : vector<1x128xf32>
    %cst_20 = arith.constant 0.000000e+00 : f32
    %52 = vector.broadcast %cst_20 : f32 to vector<1x128xf32>
    %53 = arith.maximumf %51, %52 : vector<1x128xf32>
    %cst_21 = arith.constant 9.99999974E-6 : f32
    %54 = vector.broadcast %cst_21 : f32 to vector<1x128xf32>
    %55 = arith.addf %53, %54 : vector<1x128xf32>
    %56 = math.rsqrt %55 : vector<1x128xf32>
    %57 = arith.mulf %38, %56 : vector<1x128xf32>
    %58 = arith.mulf %44, %57 : vector<1x128xf32>
    %59 = arith.subf %39, %58 : vector<1x128xf32>
    %60 = vector.broadcast %57 : vector<1x128xf32> to vector<8x128xf32>
    %61 = arith.mulf %35, %60 : vector<8x128xf32>
    %62 = vector.broadcast %59 : vector<1x128xf32> to vector<8x128xf32>
    %63 = arith.addf %61, %62 : vector<8x128xf32>
    %c1_22 = arith.constant 1 : index
    %c0_23 = arith.constant 0 : index
    %c0_24 = arith.constant 0 : index
    %64 = vector.load %arg1[%c1_22, %c0_23, %c0_24] : memref<3x128x128xf32, #tpu.memory_space<vmem>>, vector<1x128x128xf32>
    %65 = vector.shape_cast %64 : vector<1x128x128xf32> to vector<128x128xf32>
    %cst_25 = arith.constant dense<0.000000e+00> : vector<8x128xf32>
    %66 = tpu.matmul %63, %65, %cst_25 {dimension_numbers = #tpu.dot_dimension_numbers<[1], [0], [0], [1], [0, 0, 1, 1], [], []>} : vector<8x128xf32>, vector<128x128xf32>, vector<8x128xf32> -> vector<8x128xf32>
    %67 = vector.broadcast %40 : vector<1x128xf32> to vector<8x128xf32>
    %68 = arith.addf %66, %67 : vector<8x128xf32>
    %cst_26 = arith.constant 0.000000e+00 : f32
    %69 = vector.broadcast %cst_26 : f32 to vector<8x128xf32>
    %70 = arith.maximumf %68, %69 : vector<8x128xf32>
    %c2 = arith.constant 2 : index
    %c0_27 = arith.constant 0 : index
    %c0_28 = arith.constant 0 : index
    %71 = vector.load %arg2[%c2, %c0_27, %c0_28] : memref<3x8x128xf32, #tpu.memory_space<vmem>>, vector<1x8x128xf32>
    %72 = vector.shape_cast %71 : vector<1x8x128xf32> to vector<8x128xf32>
    %73 = vector.extract_strided_slice %72 {offsets = [0, 0], sizes = [1, 128], strides = [1, 1]} : vector<8x128xf32> to vector<1x128xf32>
    %74 = vector.extract_strided_slice %72 {offsets = [1, 0], sizes = [1, 128], strides = [1, 1]} : vector<8x128xf32> to vector<1x128xf32>
    %75 = vector.extract_strided_slice %72 {offsets = [2, 0], sizes = [1, 128], strides = [1, 1]} : vector<8x128xf32> to vector<1x128xf32>
    %cst_29 = arith.constant dense<0.000000e+00> : vector<128xf32>
    %76 = vector.multi_reduction <add>, %70, %cst_29 [0] : vector<8x128xf32> to vector<128xf32>
    %77 = vector.shape_cast %76 : vector<128xf32> to vector<1x128xf32>
    %cst_30 = arith.constant 8.000000e+00 : f32
    %78 = vector.broadcast %cst_30 : f32 to vector<1x128xf32>
    %79 = arith.divf %77, %78 : vector<1x128xf32>
    %80 = arith.mulf %70, %70 : vector<8x128xf32>
    %cst_31 = arith.constant dense<0.000000e+00> : vector<128xf32>
    %81 = vector.multi_reduction <add>, %80, %cst_31 [0] : vector<8x128xf32> to vector<128xf32>
    %82 = vector.shape_cast %81 : vector<128xf32> to vector<1x128xf32>
    %cst_32 = arith.constant 8.000000e+00 : f32
    %83 = vector.broadcast %cst_32 : f32 to vector<1x128xf32>
    %84 = arith.divf %82, %83 : vector<1x128xf32>
    %85 = arith.mulf %79, %79 : vector<1x128xf32>
    %86 = arith.subf %84, %85 : vector<1x128xf32>
    %cst_33 = arith.constant 0.000000e+00 : f32
    %87 = vector.broadcast %cst_33 : f32 to vector<1x128xf32>
    %88 = arith.maximumf %86, %87 : vector<1x128xf32>
    %cst_34 = arith.constant 9.99999974E-6 : f32
    %89 = vector.broadcast %cst_34 : f32 to vector<1x128xf32>
    %90 = arith.addf %88, %89 : vector<1x128xf32>
    %91 = math.rsqrt %90 : vector<1x128xf32>
    %92 = arith.mulf %73, %91 : vector<1x128xf32>
    %93 = arith.mulf %79, %92 : vector<1x128xf32>
    %94 = arith.subf %74, %93 : vector<1x128xf32>
    %95 = vector.broadcast %92 : vector<1x128xf32> to vector<8x128xf32>
    %96 = arith.mulf %70, %95 : vector<8x128xf32>
    %97 = vector.broadcast %94 : vector<1x128xf32> to vector<8x128xf32>
    %98 = arith.addf %96, %97 : vector<8x128xf32>
    %c2_35 = arith.constant 2 : index
    %c0_36 = arith.constant 0 : index
    %c0_37 = arith.constant 0 : index
    %99 = vector.load %arg1[%c2_35, %c0_36, %c0_37] : memref<3x128x128xf32, #tpu.memory_space<vmem>>, vector<1x128x128xf32>
    %100 = vector.shape_cast %99 : vector<1x128x128xf32> to vector<128x128xf32>
    %cst_38 = arith.constant dense<0.000000e+00> : vector<8x128xf32>
    %101 = tpu.matmul %98, %100, %cst_38 {dimension_numbers = #tpu.dot_dimension_numbers<[1], [0], [0], [1], [0, 0, 1, 1], [], []>} : vector<8x128xf32>, vector<128x128xf32>, vector<8x128xf32> -> vector<8x128xf32>
    %102 = vector.broadcast %75 : vector<1x128xf32> to vector<8x128xf32>
    %103 = arith.addf %101, %102 : vector<8x128xf32>
    %104 = vector.extract_strided_slice %103 {offsets = [0, 0], sizes = [8, 8], strides = [1, 1]} : vector<8x128xf32> to vector<8x8xf32>
    %c0_39 = arith.constant 0 : index
    %c0_40 = arith.constant 0 : index
    %105 = vector.load %arg3[%c0_39, %c0_40] : memref<8x8xf32, #tpu.memory_space<vmem>>, vector<8x8xf32>
    tpu.vector_store %arg3[%c0_39, %c0_40], %104 {strides = array<i32>} : memref<8x8xf32, #tpu.memory_space<vmem>>, vector<8x8xf32>,
    return
  }
}

</mosaic_0001>

<bundles_post_ra>
// kernel: ffnet_v1_forward.1
= control target key start
LH: loop header
LB: loop body
LE: loop exit
PB: predicated region body
PF: predicated region fallthrough
CT: control target
= control target key end

     0   :  { %8 = vsyncpa [#allocation3], 0  ;;  %s457_s0 = inlined_call_operand.vmem [shape: f32[8,128], index: 0, kind: input, shape index: {}]   ;;  %s458_s1 = inlined_call_operand.hbm [shape: f32[3,128,128], index: 1, kind: input, shape index: {}]   ;;  %s459_s2 = inlined_call_operand.hbm [shape: f32[3,8,128], index: 2, kind: input, shape index: {}]   ;;  %s460_s3 = inlined_call_operand.hbm [shape: f32[8,8], index: 3, kind: output, shape index: {}]  }
   0x1   :  { %9 = vsyncpa [#allocation6], 0 }
   0x2   :  { %10 = vsyncpa [#allocation4], 0  ;;  %s17_s14 = sshll.u32 %s458_s1, 4  ;;  %s404_s15 = smov [#allocation2]   ;;  %s18_s14 = int_to_ptr.hbm [resolvable:$true] %s17_s14 }
   0x3   :  { %s19_s16 = sshll.u32 %s404_s15, 4  ;;  %s30_s19 = sshll.u32 %s459_s2, 4  ;;  %s20_s16 = int_to_ptr.vmem [resolvable:$true] %s19_s16  ;;  %s31_s19 = int_to_ptr.hbm [resolvable:$true] %s30_s19 }
   0x4   :  { %s405_s20 = smov 128   ;;  %s406_s21 = smov 8  }
   0x5   :  { %25 = dma.hbm_to_vmem [thread:$0]  %s18_s14, 6144, %s20_s16, [#allocation3], %s405_s20, %s405_s20, %s406_s21  }
   0x6   :  { %s407_s22 = smov [#allocation5]  }
   0x7   :  { %s32_s23 = sshll.u32 %s407_s22, 4  ;;  %s33_s23 = int_to_ptr.vmem [resolvable:$true] %s32_s23 }
   0x8   :  { %38 = dma.hbm_to_vmem [thread:$0]  %s31_s19, 384, %s33_s23, [#allocation6], %s405_s20, %s405_s20, %s406_s21  }
   0x9   :  { %398 = dma.done.wait [#allocation3], 6144  }
   0xa   :  { %399 = vsyncadd [#allocation3], 4294961152 }
   0xb   :  { %400 = dma.done.wait [#allocation6], 384  }
   0xc   :  { %401 = vsyncadd [#allocation6], 4294966912  ;;  %v408_v0 = vmov 8.0   ;;  %v110_v2 = vld [vmem:[#allocation2 + $0x78] sm:$0xff]  ;;  %v109_v3 = vld [vmem:[#allocation2 + $0x70] sm:$0xff]  ;;  %s301_s27 = sshll.u32 %s460_s3, 4  ;;  %s302_s27 = int_to_ptr.hbm [resolvable:$true] %s301_s27 }
   0xd   :  { %318 = vrcp.f32 %v408_v0  ;;  %112 = vmatpush.msra.mxu0 %v110_v2  ;;  %v108_v5 = vld [vmem:[#allocation2 + $0x68] sm:$0xff]  ;;  %v107_v7 = vld [vmem:[#allocation2 + $0x60] sm:$0xff]  ;;  %v106_v9 = vld [vmem:[#allocation2 + $0x58] sm:$0xff]  ;;  %vm292_vm10 = vcmask 64512  }
   0xe   :  { %v439_v8 = vld [vmem:[%s457_s0] sm:$0xff]  ;;  %v105_v13 = vld [vmem:[#allocation2 + $0x50] sm:$0xff]  ;;  %v104_v16 = vld [vmem:[#allocation2 + $0x48] sm:$0xff]  ;;  %s409_s0 = smov [#allocation7]  }
   0xf   :  { %113 = vmatpush.msra.mxu0 %v109_v3  ;;  %v49_v10 = vrot.slane %v439_v8, 4  ;;  %v63_v11 = vmul.f32 %v439_v8, %v439_v8  ;;  %v103_v20 = vld [vmem:[#allocation2 + $0x40] sm:$0xff]  ;;  %v102_v23 = vld [vmem:[#allocation2 + $0x38] sm:$0xff]  ;;  %v101_v27 = vld [vmem:[#allocation2 + $0x30] sm:$0xff]  ;;  %s299_s24 = sshll.u32 %s409_s0, 4  ;;  %s300_s24 = int_to_ptr.vmem [resolvable:$true] %s299_s24 }
  0x10   :  { %v100_v30 = vld [vmem:[#allocation2 + $0x28] sm:$0xff]  ;;  %v99_v33 = vld [vmem:[#allocation2 + $0x20] sm:$0xff]  ;;  %v98_v36 = vld [vmem:[#allocation2 + $0x18] sm:$0xff] }
  0x11   :  { %114 = vmatpush.msra.mxu0 %v108_v5  ;;  %v50_v14 = vadd.f32 %v49_v10, %v439_v8  ;;  %v64_v15 = vrot.slane %v63_v11, 4  ;;  %v97_v38 = vld [vmem:[#allocation2 + $0x10] sm:$0xff]  ;;  %v96_v40 = vld [vmem:[#allocation2 + $0x8] sm:$0xff]  ;;  %v95_v42 = vld [vmem:[#allocation2] sm:$0xff] }
  0x12   :  { %v48_v48 = vld [vmem:[#allocation5] sm:$0xff]  ;;  %v190_v59 = vld [vmem:[#allocation2 + $0xf8] sm:$0xff]  ;;  %v189_v60 = vld [vmem:[#allocation2 + $0xf0] sm:$0xff] }
  0x13   :  { %v319_v1 = vpop.eup %318  ;;  %115 = vmatpush.msra.mxu0 %v107_v7  ;;  %v51_v17 = vrot.slane %v50_v14, 2  ;;  %v65_v18 = vadd.f32 %v64_v15, %v63_v11  ;;  %192 = vmatpush.msra.mxu1 %v190_v59  ;;  %v188_v61 = vld [vmem:[#allocation2 + $0xe8] sm:$0xff]  ;;  %v187_v62 = vld [vmem:[#allocation2 + $0xe0] sm:$0xff]  ;;  %v186_v63 = vld [vmem:[#allocation2 + $0xd8] sm:$0xff]  ;;  %v111_v2 = vperm.slane %v48_v48, 2 }
  0x14   :  { %v56_v4 = vmul.f32 8.0, %v319_v1  ;;  %vm60_vm0 = vweird.f32 %v319_v1  ;;  %v185_v0 = vld [vmem:[#allocation2 + $0xd0] sm:$0xff]  ;;  %v183_v3 = vld [vmem:[#allocation2 + $0xc0] sm:$0xff]  ;;  %v178_v15 = vld [vmem:[#allocation2 + $0x98] sm:$0xff] }
  0x15   :  { %116 = vmatpush.msra.mxu0 %v106_v9  ;;  %v52_v21 = vadd.f32 %v51_v17, %v50_v14  ;;  %v66_v22 = vrot.slane %v65_v18, 2  ;;  %193 = vmatpush.msra.mxu1 %v189_v60  ;;  %v181_v7 = vld [vmem:[#allocation2 + $0xb0] sm:$0xff]  ;;  %v180_v9 = vld [vmem:[#allocation2 + $0xa8] sm:$0xff]  ;;  %v263_v59 = vld [vmem:[#allocation2 + $0x140] sm:$0xff] }
  0x16   :  { %v57_v6 = vsub.f32 1.0, %v56_v4  ;;  %v182_v4 = vld [vmem:[#allocation2 + $0xb8] sm:$0xff] }
  0x17   :  { %117 = vmatpush.msra.mxu0 %v105_v13  ;;  %v53_v24 = vrot.slane %v52_v21, 1  ;;  %v67_v25 = vadd.f32 %v66_v22, %v65_v18  ;;  %194 = vmatpush.msra.mxu1 %v188_v61  ;;  %v177_v18 = vld [vmem:[#allocation2 + $0x90] sm:$0xff]  ;;  %v262_v60 = vld [vmem:[#allocation2 + $0x138] sm:$0xff] }
  0x18   :  { %v58_v12 = vmul.f32 %v319_v1, %v57_v6 }
  0x19   :  { %118 = vmatpush.msra.mxu0 %v104_v16  ;;  %v54_v28 = vadd.f32 %v53_v24, %v52_v21  ;;  %v68_v29 = vrot.slane %v67_v25, 1  ;;  %195 = vmatpush.msra.mxu1 %v187_v62  ;;  %v176_v21 = vld [vmem:[#allocation2 + $0x88] sm:$0xff] }
  0x1a   :  { %v59_v19 = vadd.f32 %v319_v1, %v58_v12  ;;  %v179_v12 = vld [vmem:[#allocation2 + $0xa0] sm:$0xff] }
  0x1b   :  { %119 = vmatpush.msra.mxu0 %v103_v20  ;;  %v69_v32 = vadd.f32 %v68_v29, %v67_v25  ;;  %196 = vmatpush.msra.mxu1 %v186_v63  ;;  %v261_v63 = vld [vmem:[#allocation2 + $0x130] sm:$0xff] }
  0x1c   :  { %v445_v26 = vsel %vm60_vm0, %v319_v1, %v59_v19  ;;  %v184_v1 = vld [vmem:[#allocation2 + $0xc8] sm:$0xff] }
  0x1d   :  { %120 = vmatpush.msra.mxu0 %v102_v23  ;;  %v62_v31 = vmul.f32 %v445_v26, %v54_v28  ;;  %v70_v34 = vmul.f32 %v69_v32, %v445_v26  ;;  %197 = vmatpush.msra.mxu1 %v185_v0  ;;  %v175_v23 = vld [vmem:[#allocation2 + $0x80] sm:$0xff] }
  0x1f   :  { %121 = vmatpush.msra.mxu0 %v101_v27  ;;  %v71_v35 = vmul.f32 %v62_v31, %v62_v31  ;;  %198 = vmatpush.msra.mxu1 %v184_v1  ;;  %v260_v1 = vld [vmem:[#allocation2 + $0x128] sm:$0xff] }
  0x21   :  { %122 = vmatpush.msra.mxu0 %v100_v30  ;;  %v72_v37 = vsub.f32 %v70_v34, %v71_v35  ;;  %199 = vmatpush.msra.mxu1 %v183_v3 }
  0x23   :  { %123 = vmatpush.msra.mxu0 %v99_v33  ;;  %v73_v39 = vmax.f32 %v72_v37, 0.0  ;;  %200 = vmatpush.msra.mxu1 %v182_v4  ;;  %v259_v4 = vld [vmem:[#allocation2 + $0x120] sm:$0xff] }
  0x25   :  { %124 = vmatpush.msra.mxu0 %v98_v36  ;;  %v74_v41 = vadd.f32 1e-05, %v73_v39  ;;  %201 = vmatpush.msra.mxu1 %v181_v7  ;;  %v258_v7 = vld [vmem:[#allocation2 + $0x118] sm:$0xff] }
  0x27   :  { %125 = vmatpush.msra.mxu0 %v97_v38  ;;  %320 = vrsqrt.f32 %v74_v41  ;;  %vm81_vm1 = vweird.f32 %v74_v41  ;;  %202 = vmatpush.msra.mxu1 %v180_v9 }
  0x29   :  { %126 = vmatpush.msra.mxu0 %v96_v40  ;;  %203 = vmatpush.msra.mxu1 %v179_v12  ;;  %v134_v40 = vld [vmem:[#allocation5 + $0x8] sm:$0xff] }
  0x2b   :  { %127 = vmatpush.msra.mxu0 %v95_v42  ;;  %204 = vmatpush.msra.mxu1 %v178_v15  ;;  %v255_v15 = vld [vmem:[#allocation2 + $0x100] sm:$0xff] }
  0x2d   :  { %v321_v43 = vpop.eup %320  ;;  %205 = vmatpush.msra.mxu1 %v177_v18 }
  0x2e   :  { %v76_v44 = vmul.f32 %v321_v43, %v74_v41  ;;  %vm82_vm2 = vweird.f32 %v321_v43 }
  0x2f   :  { %vm83_vm3 = vmor %vm81_vm1, %vm82_vm2  ;;  %206 = vmatpush.msra.mxu1 %v176_v21 }
  0x30   :  { %v77_v45 = vmul.f32 %v321_v43, %v76_v44 }
  0x31   :  { %207 = vmatpush.msra.mxu1 %v175_v23 }
  0x32   :  { %v78_v46 = vmul.f32 0.5, %v77_v45 }
  0x34   :  { %v79_v47 = vsub.f32 1.5, %v78_v46 }
  0x36   :  { %v80_v49 = vmul.f32 %v321_v43, %v79_v47 }
  0x38   :  { %v84_v50 = vsel %vm83_vm3, %v321_v43, %v80_v49 }
  0x39   :  { %v85_v51 = vmul.f32 %v84_v50, %v48_v48 }
  0x3b   :  { %v86_v52 = vmul.f32 %v85_v51, %v62_v31  ;;  %v91_v53 = vperm.slane %v85_v51, 0  ;;  %v270_v51 = vld [vmem:[#allocation2 + $0x178] sm:$0xff] }
  0x3c   :  { %272 = vmatpush.msra.mxu2 %v270_v51 }
  0x3d   :  { %v88_v54 = vrot.slane %v86_v52, 7  ;;  %v92_v56 = vmul.f32 %v91_v53, %v439_v8  ;;  %v269_v52 = vld [vmem:[#allocation2 + $0x170] sm:$0xff]  ;;  %v268_v53 = vld [vmem:[#allocation2 + $0x168] sm:$0xff] }
  0x3e   :  { %273 = vmatpush.msra.mxu2 %v269_v52 }
  0x3f   :  { %v90_v55 = vsub.f32 %v48_v48, %v88_v54  ;;  %v267_v54 = vld [vmem:[#allocation2 + $0x160] sm:$0xff] }
  0x40   :  { %274 = vmatpush.msra.mxu2 %v268_v53 }
  0x41   :  { %v93_v57 = vperm.slane %v90_v55, 1  ;;  %v266_v55 = vld [vmem:[#allocation2 + $0x158] sm:$0xff] }
  0x42   :  { %275 = vmatpush.msra.mxu2 %v267_v54 }
  0x43   :  { %v94_v58 = vadd.f32 %v93_v57, %v92_v56  ;;  %v265_v56 = vld [vmem:[#allocation2 + $0x150] sm:$0xff]  ;;  %v264_v57 = vld [vmem:[#allocation2 + $0x148] sm:$0xff] }
  0x44   :  { %276 = vmatpush.msra.mxu2 %v266_v55 }
  0x45   :  { %128 = vmatmul.f32.vlgmr.msra.gmra.mxu0 %v94_v58  ;;  %v191_v58 = vperm.slane %v134_v40, 2 }
  0x46   :  { %277 = vmatpush.msra.mxu2 %v265_v56 }
  0x48   :  { %278 = vmatpush.msra.mxu2 %v264_v57 }
  0x4a   :  { %279 = vmatpush.msra.mxu2 %v263_v59 }
  0x4c   :  { %280 = vmatpush.msra.mxu2 %v262_v60 }
  0x4e   :  { %281 = vmatpush.msra.mxu2 %v261_v63 }
  0x50   :  { %282 = vmatpush.msra.mxu2 %v260_v1 }
  0x52   :  { %283 = vmatpush.msra.mxu2 %v259_v4 }
  0x54   :  { %284 = vmatpush.msra.mxu2 %v258_v7 }
  0xc2   :  { %v129_v5 = vpop.f32.mrf.mxu0 }
  0xc3   :  { %v130_v6 = vadd.f32 %v129_v5, %v111_v2 }
  0xc5   :  { %v132_v8 = vmax.f32 %v130_v6, 0.0 }
  0xc7   :  { %v135_v10 = vrot.slane %v132_v8, 4  ;;  %v142_v11 = vmul.f32 %v132_v8, %v132_v8 }
  0xc9   :  { %v136_v13 = vadd.f32 %v135_v10, %v132_v8  ;;  %v143_v14 = vrot.slane %v142_v11, 4  ;;  %v257_v10 = vld [vmem:[#allocation2 + $0x110] sm:$0xff] }
  0xca   :  { %285 = vmatpush.msra.mxu2 %v257_v10 }
  0xcb   :  { %v137_v16 = vrot.slane %v136_v13, 2  ;;  %v144_v17 = vadd.f32 %v143_v14, %v142_v11 }
  0xcd   :  { %v138_v19 = vadd.f32 %v137_v16, %v136_v13  ;;  %v145_v20 = vrot.slane %v144_v17, 2  ;;  %v256_v13 = vld [vmem:[#allocation2 + $0x108] sm:$0xff] }
  0xce   :  { %286 = vmatpush.msra.mxu2 %v256_v13 }
  0xcf   :  { %v146_v22 = vadd.f32 %v145_v20, %v144_v17  ;;  %v139_v24 = vrot.slane %v138_v19, 1 }
  0xd0   :  { %287 = vmatpush.msra.mxu2 %v255_v15 }
  0xd1   :  { %v147_v25 = vrot.slane %v146_v22, 1  ;;  %v140_v27 = vadd.f32 %v139_v24, %v138_v19 }
  0xd3   :  { %v148_v28 = vadd.f32 %v147_v25, %v146_v22  ;;  %v141_v29 = vmul.f32 %v140_v27, %v445_v26 }
  0xd5   :  { %v149_v30 = vmul.f32 %v148_v28, %v445_v26  ;;  %v150_v31 = vmul.f32 %v141_v29, %v141_v29 }
  0xd7   :  { %v151_v32 = vsub.f32 %v149_v30, %v150_v31 }
  0xd9   :  { %v152_v33 = vmax.f32 %v151_v32, 0.0  ;;  %v214_v32 = vld [vmem:[#allocation5 + $0x10] sm:$0xff] }
  0xdb   :  { %v153_v34 = vadd.f32 1e-05, %v152_v33 }
  0xdd   :  { %322 = vrsqrt.f32 %v153_v34  ;;  %vm160_vm5 = vweird.f32 %v153_v34 }
  0xe3   :  { %v323_v35 = vpop.eup %322 }
  0xe4   :  { %v155_v36 = vmul.f32 %v323_v35, %v153_v34  ;;  %vm161_vm4 = vweird.f32 %v323_v35 }
  0xe5   :  { %vm162_vm6 = vmor %vm160_vm5, %vm161_vm4 }
  0xe6   :  { %v156_v37 = vmul.f32 %v323_v35, %v155_v36 }
  0xe8   :  { %v157_v38 = vmul.f32 0.5, %v156_v37 }
  0xea   :  { %v158_v39 = vsub.f32 1.5, %v157_v38 }
  0xec   :  { %v159_v41 = vmul.f32 %v323_v35, %v158_v39 }
  0xee   :  { %v163_v42 = vsel %vm162_vm6, %v323_v35, %v159_v41 }
  0xef   :  { %v164_v43 = vmul.f32 %v163_v42, %v134_v40  ;;  %v271_v42 = vperm.slane %v214_v32, 2 }
  0xf1   :  { %v165_v44 = vmul.f32 %v164_v43, %v141_v29  ;;  %v170_v46 = vperm.slane %v164_v43, 0 }
  0xf3   :  { %v167_v45 = vrot.slane %v165_v44, 7  ;;  %v171_v48 = vmul.f32 %v170_v46, %v132_v8 }
  0xf5   :  { %v169_v47 = vsub.f32 %v134_v40, %v167_v45 }
  0xf7   :  { %v172_v49 = vperm.slane %v169_v47, 1 }
  0xf9   :  { %v173_v50 = vadd.f32 %v172_v49, %v171_v48 }
  0xfb   :  { %208 = vmatmul.f32.vlgmr.msra.gmra.mxu1 %v173_v50 }
 0x178   :  { %v209_v61 = vpop.f32.mrf.mxu1 }
 0x179   :  { %v210_v62 = vadd.f32 %v209_v61, %v191_v58 }
 0x17b   :  { %v212_v0 = vmax.f32 %v210_v62, 0.0 }
 0x17d   :  { %v215_v2 = vrot.slane %v212_v0, 4  ;;  %v222_v3 = vmul.f32 %v212_v0, %v212_v0 }
 0x17f   :  { %v216_v5 = vadd.f32 %v215_v2, %v212_v0  ;;  %v223_v6 = vrot.slane %v222_v3, 4 }
 0x181   :  { %v217_v8 = vrot.slane %v216_v5, 2  ;;  %v224_v9 = vadd.f32 %v223_v6, %v222_v3 }
 0x183   :  { %v218_v11 = vadd.f32 %v217_v8, %v216_v5  ;;  %v225_v12 = vrot.slane %v224_v9, 2 }
 0x185   :  { %v226_v14 = vadd.f32 %v225_v12, %v224_v9  ;;  %v219_v16 = vrot.slane %v218_v11, 1 }
 0x187   :  { %v227_v17 = vrot.slane %v226_v14, 1  ;;  %v220_v18 = vadd.f32 %v219_v16, %v218_v11 }
 0x189   :  { %v228_v19 = vadd.f32 %v227_v17, %v226_v14  ;;  %v221_v20 = vmul.f32 %v220_v18, %v445_v26 }
 0x18b   :  { %v229_v21 = vmul.f32 %v228_v19, %v445_v26  ;;  %v230_v22 = vmul.f32 %v221_v20, %v221_v20 }
 0x18d   :  { %v231_v23 = vsub.f32 %v229_v21, %v230_v22 }
 0x18f   :  { %v232_v24 = vmax.f32 %v231_v23, 0.0 }
 0x191   :  { %v233_v25 = vadd.f32 1e-05, %v232_v24 }
 0x193   :  { %324 = vrsqrt.f32 %v233_v25  ;;  %vm240_vm8 = vweird.f32 %v233_v25 }
 0x199   :  { %v325_v27 = vpop.eup %324 }
 0x19a   :  { %v235_v28 = vmul.f32 %v325_v27, %v233_v25  ;;  %vm241_vm7 = vweird.f32 %v325_v27 }
 0x19b   :  { %vm242_vm9 = vmor %vm240_vm8, %vm241_vm7 }
 0x19c   :  { %v236_v29 = vmul.f32 %v325_v27, %v235_v28 }
 0x19e   :  { %v237_v30 = vmul.f32 0.5, %v236_v29 }
 0x1a0   :  { %v238_v31 = vsub.f32 1.5, %v237_v30 }
 0x1a2   :  { %v239_v33 = vmul.f32 %v325_v27, %v238_v31 }
 0x1a4   :  { %v243_v34 = vsel %vm242_vm9, %v325_v27, %v239_v33 }
 0x1a5   :  { %v244_v35 = vmul.f32 %v243_v34, %v214_v32 }
 0x1a7   :  { %v245_v36 = vmul.f32 %v244_v35, %v221_v20  ;;  %v250_v26 = vperm.slane %v244_v35, 0 }
 0x1a9   :  { %v247_v37 = vrot.slane %v245_v36, 7  ;;  %v251_v39 = vmul.f32 %v250_v26, %v212_v0 }
 0x1ab   :  { %v249_v38 = vsub.f32 %v214_v32, %v247_v37 }
 0x1ad   :  { %v252_v40 = vperm.slane %v249_v38, 1 }
 0x1af   :  { %v253_v41 = vadd.f32 %v252_v40, %v251_v39 }
 0x1b1   :  { %288 = vmatmul.f32.vlgmr.msra.gmra.mxu2 %v253_v41 }
 0x234   :  { %v289_v43 = vpop.f32.mrf.mxu2 }
 0x235   :  { %v290_v44 = vadd.f32 %v289_v43, %v271_v42 }
 0x237   :  { %293 = vst.msk [vmem:[#allocation7] sm:$0xff] %vm292_vm10, %v290_v44 }
 0x238   :  { %304 = dma.vmem_to_hbm [thread:$0]  %s300_s24, 128, %s302_s27, [#allocation4]  }
 0x239   :  { %402 = dma.done.wait [#allocation4], 128  }
 0x23a   :  { %403 = vsyncadd [#allocation4], 4294967168 }
 0x23b   :  { %309 = vsyncpa [#allocation3], 1 }
 0x23c   :  { %310 = vsyncpa [#allocation6], 1 }
 0x23d   :  { %311 = vsyncpa [#allocation4], 1 }

</bundles_post_ra>
